<compile_context>
chip_gen: v5e
topology: v5e:2x2
jax: 0.10.0
libtpu: 0.0.40
codegen_flags: <defaults>
</compile_context>

<pallas_src>
import functools
import math

import numpy as np
import jax
import jax.numpy as jnp
from jax.experimental import pallas as pl
from jax.experimental.pallas import tpu as pltpu

RGB_PAD = 8   # to_rgb output channels padded 3 -> 8 for MXU-N / lane utilisation


# ----------------------------------------------------------------------------
# Small matmul kernels (l1 linear, conv1 1x1)
# ----------------------------------------------------------------------------
def _matmul_bias_kernel(x_ref, w_ref, b_ref, o_ref):
    acc = jnp.dot(x_ref[...], w_ref[...], preferred_element_type=jnp.float32) + b_ref[...]
    o_ref[...] = acc.astype(o_ref.dtype)


def linear(x2d, w, b2d, out_dtype=jnp.float32):
    n = x2d.shape[0]
    cout = w.shape[1]
    return pl.pallas_call(
        _matmul_bias_kernel,
        out_shape=jax.ShapeDtypeStruct((n, cout), out_dtype),
    )(x2d, w, b2d)


def conv1x1(x2d, w, b2d, out_dtype=jnp.bfloat16, rows_per_block=512):
    # 1x1 conv == row-wise matmul.  Tiny row counts (demo shapes) -> one ungridded matmul
    # (feedback item 8); large row counts -> 512-row blocks to fill the MXU.
    n, cin = x2d.shape
    cout = w.shape[1]
    if n < 2 * rows_per_block or n % rows_per_block != 0:
        return linear(x2d, w, b2d, out_dtype=out_dtype)
    return pl.pallas_call(
        _matmul_bias_kernel,
        grid=(n // rows_per_block,),
        in_specs=[
            pl.BlockSpec((rows_per_block, cin), lambda i: (i, 0)),
            pl.BlockSpec((cin, cout), lambda i: (0, 0)),
            pl.BlockSpec((1, cout), lambda i: (0, 0)),
        ],
        out_specs=pl.BlockSpec((rows_per_block, cout), lambda i: (i, 0)),
        out_shape=jax.ShapeDtypeStruct((n, cout), out_dtype),
        compiler_params=pltpu.CompilerParams(dimension_semantics=("parallel",)),
    )(x2d, w, b2d)


# ----------------------------------------------------------------------------
# Shared tap-buffer builder: zero-guarded flattened image -> (HW, 9C) masked bf16 taps
# ----------------------------------------------------------------------------
def _build_tap(padf_ref, tap_ref, src_bf16, ml, mr, H, W, C):
    HW = H * W
    GUARD = W + 1
    padf_ref[GUARD:GUARD + HW, :] = src_bf16
    for t in range(9):
        dy, dx = t // 3 - 1, t % 3 - 1
        sh = dy * W + dx
        tap = padf_ref[GUARD + sh:GUARD + sh + HW, :]
        if dx == -1:
            tap = tap * ml
        elif dx == 1:
            tap = tap * mr
        tap_ref[:, t * C:(t + 1) * C] = tap


def _col_masks(H, W):
    # Row-boundary masks for the +/-1 column taps (0/1, exact in bf16); computed statically.
    xs = np.arange(H * W) % W
    ml = jnp.asarray((xs != 0).reshape(H * W, 1), jnp.bfloat16)       # dx == -1
    mr = jnp.asarray((xs != W - 1).reshape(H * W, 1), jnp.bfloat16)   # dx == +1
    return ml, mr


def _edge_tables(n_nodes):
    # TODO(synk): cfg_cell / cfg_ops registry entries are not in the snippet; we use the standard
    # dense DAG (node j sums one mixed edge from every previous state) with ops
    # {0: zeros, 1: identity, 2: conv3x3+ReLU}, module edge order assumed destination-major.
    dst_major = [(j, s) for j in range(n_nodes) for s in range(j + 1)]
    # Kernel edge-grid order: SOURCE-major, so every source's tap buffer is built once and
    # node s is always finalized before any edge consumes it as a source.
    src_major = [(j, s) for s in range(n_nodes) for j in range(s, n_nodes)]
    orig = {js: k for k, js in enumerate(dst_major)}
    perm = [orig[js] for js in src_major]                 # kernel edge id -> module edge id
    esrc = np.asarray([s for (_, s) in src_major], np.int32)
    edst = np.asarray([j for (j, _) in src_major], np.int32)
    return perm, esrc, edst


# ----------------------------------------------------------------------------
# DenseBlock cell kernel: grid = (batch "parallel", edge "arbitrary")
# ----------------------------------------------------------------------------
def _dense_cell_kernel(arcs_ref, esrc_ref, edst_ref,
                       h_ref, w_ref, b_ref, ml_ref, mr_ref,
                       o_ref,
                       st_ref, tap_ref, padf_ref, tapsrc_ref,
                       *, H, W, n_nodes):
    HW = H * W
    C = h_ref.shape[-1]
    GUARD = W + 1
    last = n_nodes - 1

    bidx = pl.program_id(0)
    e = pl.program_id(1)
    src = esrc_ref[e]                 # DAG source state of this edge (0 == cell input)
    dst = edst_ref[e]                 # destination node of this edge
    arc = arcs_ref[bidx, e]           # per-sample op: 0 none, 1 identity, 2 conv3x3+relu

    @pl.when(e == 0)
    def _():
        # New sample on this core: invalidate the cached tap source and zero ONLY the halo
        # guard rows (interior is fully rewritten on every tap build) -- feedback item 5.
        tapsrc_ref[0] = -1
        zg = jnp.zeros((GUARD, C), padf_ref.dtype)
        padf_ref[:GUARD, :] = zg
        padf_ref[GUARD + HW:GUARD + HW + GUARD, :] = zg

    def read_src():
        # Source 0 is the (upsampled) cell input; source s>0 is node s-1 (finalized because the
        # edge axis is source-major).  Dynamic first-axis load; garbage branch is selected away.
        return jnp.where(src == 0, h_ref[0], st_ref[jnp.maximum(src - 1, 0)])

    def add_to_dst(val):
        # Node `last` accumulates straight into the resident output block (feedback item 6).
        # Writes are unrolled over static node ids (pl.when-gated) to avoid dynamic stores.
        @pl.when(dst == last)
        def _():
            o_ref[0] = o_ref[0] + val

        for k in range(last):
            @pl.when(dst == k)
            def _(k=k):
                st_ref[k] = st_ref[k] + val

    # The first incoming edge of every node has source 0 -> zero-init its accumulator there.
    @pl.when(src == 0)
    def _():
        @pl.when(dst == last)
        def _():
            o_ref[0] = jnp.zeros((HW, C), o_ref.dtype)

        for k in range(last):
            @pl.when(dst == k)
            def _(k=k):
                st_ref[k] = jnp.zeros((HW, C), st_ref.dtype)

    @pl.when(arc == 1)                 # Identity edge
    def _():
        add_to_dst(read_src())

    @pl.when(arc == 2)                 # Conv2d 3x3 pad 1 + ReLU edge (MXU gated off otherwise)
    def _():
        # Build the (HW, 9C) masked bf16 tap buffer at most once per source (feedback item 2).
        @pl.when(tapsrc_ref[0] != src)
        def _():
            _build_tap(padf_ref, tap_ref, read_src(), ml_ref[...], mr_ref[...], H, W, C)
            tapsrc_ref[0] = src

        # Single K=9C matmul keeps the 9-tap partial sums inside the MXU result path instead of
        # round-tripping an f32 accumulator through VMEM (feedback item 1).
        acc = jnp.dot(tap_ref[...], w_ref[0], preferred_element_type=jnp.float32)
        add_to_dst(jnp.maximum(acc + b_ref[0], 0.0).astype(o_ref.dtype))
    # arc == 0: D2None -> contributes zeros (nothing to do).


def _cell_vmem_limit(HW, C, W, n_nodes):
    bf = 2
    need = 0
    need += 2 * HW * C * bf                       # input block (double-buffered)
    need += 2 * HW * C * bf                       # output block
    need += 2 * 9 * C * C * bf                    # streamed per-edge weight block
    need += 2 * C * 4                             # streamed per-edge bias block
    need += 2 * 2 * HW * bf                       # column masks
    need += (n_nodes - 1) * HW * C * bf           # node states
    need += HW * 9 * C * bf                       # tap buffer
    need += (HW + 2 * (W + 1)) * C * bf           # zero-guarded source buffer
    return int(min(max(int(need * 1.5) + (2 << 20), 32 << 20), 100 << 20))


def dense_cell(h, arcs, w_stack, b_stack, n_nodes):
    B, H, W, C = h.shape
    HW = H * W
    n_edges = n_nodes * (n_nodes + 1) // 2
    assert n_nodes >= 2 and w_stack.shape[0] == n_edges
    perm, esrc, edst = _edge_tables(n_nodes)
    arcs_sm = arcs[:, np.asarray(perm, np.int32)]        # arcs permuted into the kernel order
    ml, mr = _col_masks(H, W)

    grid_spec = pltpu.PrefetchScalarGridSpec(
        num_scalar_prefetch=3,
        grid=(B, n_edges),
        in_specs=[
            pl.BlockSpec((1, HW, C), lambda b, e, A, S, D: (b, 0, 0)),        # cell input (bf16)
            pl.BlockSpec((1, 9 * C, C), lambda b, e, A, S, D: (e, 0, 0)),     # streamed edge weight
            pl.BlockSpec((1, 1, C), lambda b, e, A, S, D: (e, 0, 0)),         # streamed edge bias
            pl.BlockSpec((HW, 1), lambda b, e, A, S, D: (0, 0)),              # left-column mask
            pl.BlockSpec((HW, 1), lambda b, e, A, S, D: (0, 0)),              # right-column mask
        ],
        out_specs=pl.BlockSpec((1, HW, C), lambda b, e, A, S, D: (b, 0, 0)),
        scratch_shapes=[
            pltpu.VMEM((n_nodes - 1, HW, C), jnp.bfloat16),     # node states (last node in o_ref)
            pltpu.VMEM((HW, 9 * C), jnp.bfloat16),              # per-source tap buffer
            pltpu.VMEM((HW + 2 * (W + 1), C), jnp.bfloat16),    # zero-guarded flattened source
            pltpu.SMEM((1,), jnp.int32),                        # which source the tap buffer holds
        ],
    )
    kernel = functools.partial(_dense_cell_kernel, H=H, W=W, n_nodes=n_nodes)
    out = pl.pallas_call(
        kernel,
        grid_spec=grid_spec,
        out_shape=jax.ShapeDtypeStruct((B, HW, C), jnp.bfloat16),
        compiler_params=pltpu.CompilerParams(
            dimension_semantics=("parallel", "arbitrary"),
            vmem_limit_bytes=_cell_vmem_limit(HW, C, W, n_nodes),
        ),
    )(arcs_sm, jnp.asarray(esrc), jnp.asarray(edst),
      h.reshape(B, HW, C), w_stack, b_stack, ml, mr)
    return out.reshape(B, H, W, C)


# ----------------------------------------------------------------------------
# Fused to_rgb kernel: BN(eval) -> ReLU -> Conv2d(ch, 3, 3, pad 1) -> Tanh
# ----------------------------------------------------------------------------
def _to_rgb_kernel(h_ref, scale_ref, shift_ref, ml_ref, mr_ref, w_ref, b_ref,
                   o_ref, padf_ref, tap_ref, *, H, W):
    HW = H * W
    C = h_ref.shape[-1]
    GUARD = W + 1

    zg = jnp.zeros((GUARD, C), padf_ref.dtype)
    padf_ref[:GUARD, :] = zg
    padf_ref[GUARD + HW:GUARD + HW + GUARD, :] = zg

    # BN (folded) + ReLU in f32 on the VPU, then one (HW, 9C) @ (9C, RGB_PAD) MXU matmul.
    x = jnp.maximum(h_ref[0].astype(jnp.float32) * scale_ref[...] + shift_ref[...], 0.0)
    _build_tap(padf_ref, tap_ref, x.astype(jnp.bfloat16), ml_ref[...], mr_ref[...], H, W, C)
    acc = jnp.dot(tap_ref[...], w_ref[...], preferred_element_type=jnp.float32)
    o_ref[0] = jnp.tanh(acc + b_ref[...])


def to_rgb(h, bn_scale, bn_shift, w_taps, bias):
    B, H, W, C = h.shape
    HW = H * W
    cout = w_taps.shape[-1]
    ml, mr = _col_masks(H, W)
    kernel = functools.partial(_to_rgb_kernel, H=H, W=W)
    out = pl.pallas_call(
        kernel,
        grid=(B,),
        in_specs=[
            pl.BlockSpec((1, HW, C), lambda b: (b, 0, 0)),
            pl.BlockSpec((1, C), lambda b: (0, 0)),
            pl.BlockSpec((1, C), lambda b: (0, 0)),
            pl.BlockSpec((HW, 1), lambda b: (0, 0)),
            pl.BlockSpec((HW, 1), lambda b: (0, 0)),
            pl.BlockSpec((9 * C, cout), lambda b: (0, 0)),
            pl.BlockSpec((1, cout), lambda b: (0, 0)),
        ],
        out_specs=pl.BlockSpec((1, HW, cout), lambda b: (b, 0, 0)),
        out_shape=jax.ShapeDtypeStruct((B, HW, cout), jnp.float32),
        scratch_shapes=[pltpu.VMEM((HW + 2 * (W + 1), C), jnp.bfloat16),
                        pltpu.VMEM((HW, 9 * C), jnp.bfloat16)],
        compiler_params=pltpu.CompilerParams(dimension_semantics=("parallel",)),
    )(h.reshape(B, HW, C), bn_scale, bn_shift, ml, mr, w_taps, bias)
    # padded RGB channels -> slice back to 3
    return out[:, :, :3].reshape(B, H, W, 3)


# ----------------------------------------------------------------------------
# Glue: upsample + forward
# ----------------------------------------------------------------------------
def upsample_nearest_2x(h):
    # TODO(synk): cfg_upsample registry entry not provided; assume nearest-neighbour x2.
    # TODO(synk): v5e follow-up -- fold this expansion into the dense_cell input path (expand in
    # VMEM) to avoid materialising the 4x-larger activation in HBM between kernels.
    h = jnp.repeat(h, 2, axis=1)
    h = jnp.repeat(h, 2, axis=2)
    return h


def forward(z, batched_arcs, params, *, ch, linear_ch, bottom_width, num_cells, n_nodes):
    n_edges = n_nodes * (n_nodes + 1) // 2
    B = z.shape[0]
    bw = bottom_width

    # l1(z).view(-1, linear_ch, bw, bw): l1 weight columns were permuted at init so the output
    # is already in NHWC order -> plain reshape here.
    h = linear(z, params["l1_w"], params["l1_b"], out_dtype=jnp.float32)
    h = h.reshape(B, bw, bw, linear_ch)

    # conv1 1x1; bf16 output feeds the bf16 cell chain (f32 accumulation stays inside kernels).
    h = conv1x1(h.reshape(B * bw * bw, linear_ch), params["conv1_w"], params["conv1_b"])
    h = h.reshape(B, bw, bw, ch)

    # cells: upsample -> DenseBlock kernel
    for ci in range(num_cells):
        h = upsample_nearest_2x(h)
        arcs = batched_arcs[:, ci * n_edges:(ci + 1) * n_edges].astype(jnp.int32)
        cp = params["cells"][ci]
        h = dense_cell(h, arcs, cp["w"], cp["b"], n_nodes)

    # to_rgb head (fused), then back to NCHW like torch
    out = to_rgb(h, params["bn_scale"], params["bn_shift"], params["rgb_w"], params["rgb_b"])
    return jnp.transpose(out, (0, 3, 1, 2))                             # (B, 3, H, W)


# ----------------------------------------------------------------------------
# Deterministic parameter init (xavier_uniform like the module's weights_init)
# ----------------------------------------------------------------------------
def _uniform(key, shape, bound):
    return jax.random.uniform(key, shape, jnp.float32, -bound, bound)


def xavier_uniform(key, shape, fan_in, fan_out, gain=1.0):
    bound = gain * math.sqrt(6.0 / (fan_in + fan_out))
    return jax.random.uniform(key, shape, jnp.float32, -bound, bound)


def init_params(key, *, dim_z, linear_ch, bottom_width, ch, num_cells, n_nodes):
    bw = bottom_width
    n_edges = n_nodes * (n_nodes + 1) // 2
    perm, _, _ = _edge_tables(n_nodes)
    num_keys = 4 + 2 * num_cells * n_edges + 3
    ki = iter(jax.random.split(key, num_keys))

    # l1: Linear(dim_z, bw*bw*linear_ch); torch weight (out, in), bias (out,)
    out_f = bw * bw * linear_ch
    w = xavier_uniform(next(ki), (out_f, dim_z), fan_in=dim_z, fan_out=out_f)
    b = _uniform(next(ki), (out_f,), 1.0 / math.sqrt(dim_z))
    # permute output columns from torch (c, y, x) order to NHWC (y, x, c) order
    l1_w = (w.T.reshape(dim_z, linear_ch, bw, bw).transpose(0, 2, 3, 1).reshape(dim_z, out_f))
    l1_b = (b.reshape(linear_ch, bw, bw).transpose(1, 2, 0).reshape(1, out_f))

    # conv1: Conv2d(linear_ch, ch, 1)
    w = xavier_uniform(next(ki), (ch, linear_ch, 1, 1), fan_in=linear_ch, fan_out=ch)
    conv1_w = w[:, :, 0, 0].T                                           # (linear_ch, ch)
    conv1_b = _uniform(next(ki), (1, ch), 1.0 / math.sqrt(linear_ch))

    # cells: per edge Conv2d(ch, ch, 3, padding=1) used when arc==2.
    # OIHW -> (ky, kx, cin, cout) -> (9*cin, cout): rows match the kernel's (HW, 9C) tap layout.
    # Edges are packed in the kernel's source-major order so they can be streamed per grid step.
    cells = []
    for _ in range(num_cells):
        ws, bs = [], []
        for _ in range(n_edges):              # generated in the module's (dst-major) edge order
            w = xavier_uniform(next(ki), (ch, ch, 3, 3), fan_in=ch * 9, fan_out=ch * 9)
            ws.append(jnp.transpose(w, (2, 3, 1, 0)).reshape(9 * ch, ch))
            bs.append(_uniform(next(ki), (1, ch), 1.0 / math.sqrt(ch * 9)))
        ws = [ws[k] for k in perm]
        bs = [bs[k] for k in perm]
        cells.append({
            "w": jnp.stack(ws).astype(jnp.bfloat16),     # (n_edges, 9*ch, ch) bf16 MXU weights
            "b": jnp.stack(bs),                          # (n_edges, 1, ch) f32 biases
        })

    # to_rgb: BatchNorm2d(ch) eval-mode w/ init running stats (mean=0, var=1) folded into scale/shift.
    # TODO(synk): cfg_out_bn registry entry not given; assumed plain BatchNorm2d.
    gamma = 1.0 + 0.02 * jax.random.normal(next(ki), (ch,), jnp.float32)
    bn_scale = (gamma / jnp.sqrt(1.0 + 1e-5)).reshape(1, ch)
    bn_shift = jnp.zeros((1, ch), jnp.float32)

    # Conv2d(ch, 3, 3, pad 1): (9*ch, 3) taps, output channels zero-padded 3 -> RGB_PAD.
    w = xavier_uniform(next(ki), (3, ch, 3, 3), fan_in=ch * 9, fan_out=3 * 9)
    w9 = jnp.transpose(w, (2, 3, 1, 0)).reshape(9 * ch, 3)
    rgb_w = jnp.zeros((9 * ch, RGB_PAD), jnp.float32).at[:, :3].set(w9).astype(jnp.bfloat16)
    rb = _uniform(next(ki), (3,), 1.0 / math.sqrt(ch * 9))
    rgb_b = jnp.zeros((1, RGB_PAD), jnp.float32).at[0, :3].set(rb)

    return {"l1_w": l1_w, "l1_b": l1_b, "conv1_w": conv1_w, "conv1_b": conv1_b,
            "cells": cells, "bn_scale": bn_scale, "bn_shift": bn_shift,
            "rgb_w": rgb_w, "rgb_b": rgb_b}


# ----------------------------------------------------------------------------
if __name__ == "__main__":
    B = 2
    DIM_Z = 32           # module default 128, scaled down for the demo
    LINEAR_CH = 16       # module default 128
    BOTTOM = 4           # bottom_width default
    CH = 32              # module default 256
    NUM_CELLS = 2        # module default 3 (spatial: 4 -> 8 -> 16)
    N_NODES = 4          # DenseBlock nodes -> 10 mixed edges per cell
    N_EDGES = N_NODES * (N_NODES + 1) // 2
    NUM_LAYERS = NUM_CELLS * N_EDGES

    key = jax.random.PRNGKey(0)
    k_z, k_arc, k_par = jax.random.split(key, 3)
    z = jax.random.normal(k_z, (B, DIM_Z), jnp.float32)
    batched_arcs = jax.random.randint(k_arc, (B, NUM_LAYERS), 0, 3, jnp.int32)

    params = init_params(k_par, dim_z=DIM_Z, linear_ch=LINEAR_CH, bottom_width=BOTTOM,
                         ch=CH, num_cells=NUM_CELLS, n_nodes=N_NODES)

    out = forward(z, batched_arcs, params, ch=CH, linear_ch=LINEAR_CH,
                  bottom_width=BOTTOM, num_cells=NUM_CELLS, n_nodes=N_NODES)
    out = jax.block_until_ready(out)

    final_hw = BOTTOM * (2 ** NUM_CELLS)
    assert out.shape == (B, 3, final_hw, final_hw)
    assert bool(jnp.all(jnp.isfinite(out)))
    print("KERNEL_OK")
</pallas_src>

<mosaic_0001>
module attributes {stable_mosaic.version = 11 : i64} {
  func.func @_matmul_bias_kernel(%arg0: memref<2x32xf32, #tpu.memory_space<vmem>>, %arg1: memref<32x256xf32, #tpu.memory_space<vmem>>, %arg2: memref<1x256xf32, #tpu.memory_space<vmem>>, %arg3: memref<2x256xf32, #tpu.memory_space<vmem>>) attributes {dimension_semantics = [], scalar_prefetch = 0 : i64, scratch_operands = 0 : i64, tpu.core_type = #tpu.core_type<tc>} {
    %c0 = arith.constant 0 : index
    %c0_0 = arith.constant 0 : index
    %0 = vector.load %arg0[%c0, %c0_0] : memref<2x32xf32, #tpu.memory_space<vmem>>, vector<2x32xf32>
    %c0_1 = arith.constant 0 : index
    %c0_2 = arith.constant 0 : index
    %1 = vector.load %arg1[%c0_1, %c0_2] : memref<32x256xf32, #tpu.memory_space<vmem>>, vector<32x256xf32>
    %cst = arith.constant dense<0.000000e+00> : vector<2x256xf32>
    %2 = tpu.matmul %0, %1, %cst {dimension_numbers = #tpu.dot_dimension_numbers<[1], [0], [0], [1], [0, 0, 1, 1], [], []>} : vector<2x32xf32>, vector<32x256xf32>, vector<2x256xf32> -> vector<2x256xf32>
    %c0_3 = arith.constant 0 : index
    %c0_4 = arith.constant 0 : index
    %3 = vector.load %arg2[%c0_3, %c0_4] : memref<1x256xf32, #tpu.memory_space<vmem>>, vector<1x256xf32>
    %4 = vector.broadcast %3 : vector<1x256xf32> to vector<2x256xf32>
    %5 = arith.addf %2, %4 : vector<2x256xf32>
    %c0_5 = arith.constant 0 : index
    %c0_6 = arith.constant 0 : index
    %6 = vector.load %arg3[%c0_5, %c0_6] : memref<2x256xf32, #tpu.memory_space<vmem>>, vector<2x256xf32>
    tpu.vector_store %arg3[%c0_5, %c0_6], %5 {strides = array<i32>} : memref<2x256xf32, #tpu.memory_space<vmem>>, vector<2x256xf32>,
    return
  }
}

</mosaic_0001>

<bundles_post_ra>
// kernel: tpu_custom_call.1
= control target key start
LH: loop header
LB: loop body
LE: loop exit
PB: predicated region body
PF: predicated region fallthrough
CT: control target
= control target key end

     0   :  { %8 = vsyncpa [#allocation3], 0  ;;  %s290_s0 = inlined_call_operand.hbm [shape: f32[2,32], index: 0, kind: input, shape index: {}]   ;;  %s291_s1 = inlined_call_operand.hbm [shape: f32[32,256], index: 1, kind: input, shape index: {}]   ;;  %s292_s2 = inlined_call_operand.hbm [shape: f32[1,256], index: 2, kind: input, shape index: {}]   ;;  %s293_s3 = inlined_call_operand.hbm [shape: f32[2,256], index: 3, kind: output, shape index: {}]  }
   0x1   :  { %9 = vsyncpa [#allocation6], 0  ;;  %s26_s14 = sshll.u32 %s291_s1, 4  ;;  %s27_s14 = int_to_ptr.hbm [resolvable:$true] %s26_s14 }
   0x2   :  { %10 = vsyncpa [#allocation4], 0  ;;  %s252_s15 = smov [#allocation5]   ;;  %s16_s19 = sshll.u32 %s290_s0, 4  ;;  %s17_s19 = int_to_ptr.hbm [resolvable:$true] %s16_s19 }
   0x3   :  { %s28_s16 = sshll.u32 %s252_s15, 4  ;;  %s253_s20 = smov 256   ;;  %s29_s16 = int_to_ptr.vmem [resolvable:$true] %s28_s16 }
   0x4   :  { %s254_s21 = smov 16   ;;  %s255_s22 = smov [#allocation2]  }
   0x5   :  { %34 = dma.hbm_to_vmem [thread:$0]  %s27_s14, 1024, %s29_s16, [#allocation6], %s253_s20, %s253_s20, %s254_s21  }
   0x6   :  { %s18_s23 = sshll.u32 %s255_s22, 4  ;;  %s40_s26 = sshll.u32 %s292_s2, 4  ;;  %s19_s23 = int_to_ptr.vmem [resolvable:$true] %s18_s23  ;;  %s41_s26 = int_to_ptr.hbm [resolvable:$true] %s40_s26 }
   0x7   :  { %21 = dma.hbm_to_vmem [thread:$0]  %s17_s19, 32, %s19_s23, [#allocation3]  }
   0x8   :  { %s256_s1 = smov [#allocation7]  }
   0x9   :  { %s42_s27 = sshll.u32 %s256_s1, 4  ;;  %s43_s27 = int_to_ptr.vmem [resolvable:$true] %s42_s27 }
   0xa   :  { %45 = dma.hbm_to_vmem [thread:$0]  %s41_s26, 32, %s43_s27, [#allocation6]  }
   0xb   :  { %246 = dma.done.wait [#allocation3], 32  }
   0xc   :  { %247 = vsyncadd [#allocation3], 4294967264 }
   0xd   :  { %248 = dma.done.wait [#allocation6], 1056  }
   0xe   :  { %249 = vsyncadd [#allocation6], 4294966240  ;;  %v66_v0 = vld [vmem:[#allocation5 + $0x38] sm:$0xff]  ;;  %v65_v1 = vld [vmem:[#allocation5 + $0x30] sm:$0xff]  ;;  %vm73_vm0 = vcmask 261120   ;;  %s257_s0 = smov [#allocation8]  }
   0xf   :  { %v64_v2 = vld [vmem:[#allocation5 + $0x28] sm:$0xff]  ;;  %109 = vmatpush.msra.mxu1 %v66_v0  ;;  %89 = vmatpush.msra.mxu0 %v65_v1  ;;  %v63_v3 = vld [vmem:[#allocation5 + $0x20] sm:$0xff]  ;;  %v62_v4 = vld [vmem:[#allocation5 + $0x18] sm:$0xff]  ;;  %s129_s2 = sshll.u32 %s257_s0, 4  ;;  %s131_s30 = sshll.u32 %s293_s3, 4  ;;  %vm120_vm1 = vcmask 1041408   ;;  %s130_s2 = int_to_ptr.vmem [resolvable:$true] %s129_s2  ;;  %s132_s30 = int_to_ptr.hbm [resolvable:$true] %s131_s30 }
  0x10   :  { %v61_v5 = vld [vmem:[#allocation5 + $0x10] sm:$0xff]  ;;  %v60_v6 = vld [vmem:[#allocation5 + $0x8] sm:$0xff]  ;;  %v59_v7 = vld [vmem:[#allocation5] sm:$0xff] }
  0x11   :  { %110 = vmatpush.msra.mxu1 %v64_v2  ;;  %90 = vmatpush.msra.mxu0 %v63_v3  ;;  %v58_v8 = vld [vmem:[#allocation2] sm:$0x3]  ;;  %v67_v9 = vld [vmem:[#allocation7] sm:$0x3] }
  0x12   :  { %v70_v10 = vperm.slane %v67_v9, 1  ;;  %v69_v11 = vperm.slane %v67_v9, 0 }
  0x13   :  { %111 = vmatpush.msra.mxu1 %v62_v4  ;;  %91 = vmatpush.msra.mxu0 %v61_v5 }
  0x15   :  { %112 = vmatpush.msra.mxu1 %v60_v6  ;;  %92 = vmatpush.msra.mxu0 %v59_v7 }
  0x16   :  { %143 = vmatmul.msk.f32.vlgmr.msra.gmra.mxu1 %vm73_vm0, %v58_v8  ;;  %142 = vmatmul.msk.f32.vlgmr.msra.gmra.mxu0 %vm73_vm0, %v58_v8 }
  0x93   :  { %v114_v12 = vpop.f32.mrf.mxu1  ;;  %v94_v13 = vpop.f32.mrf.mxu0 }
  0x94   :  { %v115_v14 = vadd.f32 %v114_v12, %v70_v10  ;;  %v95_v15 = vadd.f32 %v94_v13, %v69_v11 }
  0x96   :  { %v119_v16 = vrot.slane %v115_v14, 6 }
  0x98   :  { %v121_v17 = vsel %vm120_vm1, %v95_v15, %v119_v16 }
  0x99   :  { %123 = vst [vmem:[#allocation8] sm:$0xf] %v121_v17 }
  0x9a   :  { %134 = dma.vmem_to_hbm [thread:$0]  %s130_s2, 64, %s132_s30, [#allocation4]  }
  0x9b   :  { %250 = dma.done.wait [#allocation4], 64  }
  0x9c   :  { %251 = vsyncadd [#allocation4], 4294967232 }
  0x9d   :  { %139 = vsyncpa [#allocation3], 1 }
  0x9e   :  { %140 = vsyncpa [#allocation6], 1 }
  0x9f   :  { %141 = vsyncpa [#allocation4], 1 }

</bundles_post_ra>
